<compile_context>
chip_gen: v7x
topology: tpu7x:2x2x1
jax: 0.10.0
libtpu: 0.0.40
codegen_flags: <defaults>
</compile_context>

<pallas_src>
import functools

import jax
import jax.numpy as jnp
from jax.experimental import pallas as pl
from jax.experimental.pallas import tpu as pltpu


def _rope_table_kernel(inv_freq_ref, sin_ref, cos_ref):
    # inv_freq_ref: (half, 1)   f32   — constant block, same for every grid step
    # sin_ref/cos_ref: (half, TS) f32 — positions on the LANE axis (lane-dense)
    half, ts = sin_ref.shape
    base = pl.program_id(0) * ts
    # positions for this tile: pos[k, j] = base + j   (VPU iota, no HBM input)
    pos = base + jax.lax.broadcasted_iota(jnp.int32, (half, ts), dimension=1)
    freqs = inv_freq_ref[...] * pos.astype(jnp.float32)   # broadcast outer product
    sin_ref[...] = jnp.sin(freqs)                          # EUP, f32
    cos_ref[...] = jnp.cos(freqs)


def _choose_seq_tile(max_seq_len: int) -> int:
    """Largest tile in {2048..128} that divides max_seq_len; else one full block."""
    if max_seq_len % 128 == 0:
        for ts in (2048, 1024, 512, 256, 128):
            if ts <= max_seq_len and max_seq_len % ts == 0:
                return ts
    return max_seq_len  # single full-array block (exempt from (8,128) rule)


@functools.partial(jax.jit, static_argnums=(1, 2))
def _build_rope_tables(inv_freq_col, half: int, max_seq_len: int):
    """Run the Pallas kernel once at max_seq_len; returns (half, max_seq_len) tables."""
    ts = _choose_seq_tile(max_seq_len)
    grid = (max_seq_len // ts,)
    sin_t, cos_t = pl.pallas_call(
        _rope_table_kernel,
        out_shape=(
            jax.ShapeDtypeStruct((half, max_seq_len), jnp.float32),
            jax.ShapeDtypeStruct((half, max_seq_len), jnp.float32),
        ),
        grid_spec=pltpu.PrefetchScalarGridSpec(
            num_scalar_prefetch=0,
            grid=grid,
            in_specs=[pl.BlockSpec((half, 1), lambda i: (0, 0))],
            out_specs=(
                pl.BlockSpec((half, ts), lambda i: (0, i)),
                pl.BlockSpec((half, ts), lambda i: (0, i)),
            ),
        ),
        compiler_params=pltpu.CompilerParams(
            dimension_semantics=("parallel",),
        ),
    )(inv_freq_col)
    return sin_t, cos_t


class RotaryEmbedding:
    """JAX/Pallas port of the PyTorch RotaryEmbedding module.

    Tables are precomputed once (Pallas kernel) in __init__, exactly like the
    PyTorch register_buffer pattern.  __call__(seq_len) is a pure slice.
    """

    def __init__(self, dim, max_seq_len=2048):
        assert dim % 2 == 0, "rotary dim must be even"
        self.dim = dim
        self.max_seq_len = max_seq_len
        half = dim // 2

        # inv_freq = 1 / 10000^(arange(0, dim, 2)/dim), as a (half, 1) column so
        # it broadcasts against the lane-major (half, seq_tile) tile in-kernel.
        inv_freq_col = (
            1.0 / (10000.0 ** (jnp.arange(0, dim, 2, dtype=jnp.float32) / dim))
        ).reshape(half, 1)

        # One-time kernel launch; transpose back to (seq, half) in the cold path.
        sin_t, cos_t = _build_rope_tables(inv_freq_col, half, max_seq_len)
        self.sin = jnp.transpose(sin_t)[None, :, :]   # (1, max_seq_len, half)
        self.cos = jnp.transpose(cos_t)[None, :, :]   # (1, max_seq_len, half)

    def __call__(self, seq_len):
        # Hot path: pure slice, no kernel launch, no recompile per seq_len.
        return self.sin[:, :seq_len, :], self.cos[:, :seq_len, :]


def _reference(dim, seq_len):
    half = dim // 2
    inv_freq = 1.0 / (10000.0 ** (jnp.arange(0, dim, 2, dtype=jnp.float32) / dim))
    t = jnp.arange(seq_len, dtype=jnp.float32)
    freqs = jnp.einsum("i,j->ij", t, inv_freq)
    del half
    return jnp.sin(freqs)[None], jnp.cos(freqs)[None]


if __name__ == "__main__":
    # Deterministic setup (module has no learned params; PRNGKey kept for convention).
    _ = jax.random.PRNGKey(0)

    dim = 32            # -> dim//2 = 16 rotary frequencies
    max_seq_len = 256   # multiple of 128 -> 2 lane-dense tiles of 128 positions
    seq_len = 8

    rope = RotaryEmbedding(dim, max_seq_len=max_seq_len)

    sin, cos = rope(seq_len)
    jax.block_until_ready((sin, cos))

    # Check the sliced forward output.
    sin_ref, cos_ref = _reference(dim, seq_len)
    assert sin.shape == (1, seq_len, dim // 2)
    assert cos.shape == (1, seq_len, dim // 2)
    assert jnp.allclose(sin, sin_ref, atol=1e-5)
    assert jnp.allclose(cos, cos_ref, atol=1e-5)

    # Also check the full precomputed table (exercises every grid tile / the
    # program_id-offset iota path).
    sin_full_ref, cos_full_ref = _reference(dim, max_seq_len)
    assert jnp.allclose(rope.sin, sin_full_ref, atol=1e-5)
    assert jnp.allclose(rope.cos, cos_full_ref, atol=1e-5)

    print("KERNEL_OK")
</pallas_src>

<mosaic_0001>
module attributes {stable_mosaic.version = 11 : i64} {
  func.func @_rope_table_kernel(%arg0: i32, %arg1: memref<16x1xf32, #tpu.memory_space<vmem>>, %arg2: memref<16x256xf32, #tpu.memory_space<vmem>>, %arg3: memref<16x256xf32, #tpu.memory_space<vmem>>) attributes {dimension_semantics = [#tpu.dimension_semantics<parallel>], iteration_bounds = array<i64: 1>, scalar_prefetch = 0 : i64, scratch_operands = 0 : i64, tpu.core_type = #tpu.core_type<tc>, window_params = [{pipeline_mode = #tpu.pipeline_mode<synchronous>, transform_indices = @transform_0, window_bounds = array<i64: 16, 1>}, {transform_indices = @transform_1, window_bounds = array<i64: 16, 256>}, {transform_indices = @transform_2, window_bounds = array<i64: 16, 256>}]} {
    %c256_i32 = arith.constant 256 : i32
    %0 = arith.muli %arg0, %c256_i32 : i32
    %1 = tpu.iota {dimensions = array<i32: 1>} : vector<16x256xi32>
    %2 = vector.broadcast %0 : i32 to vector<16x256xi32>
    %3 = arith.addi %2, %1 : vector<16x256xi32>
    %c0 = arith.constant 0 : index
    %c0_0 = arith.constant 0 : index
    %4 = vector.load %arg1[%c0, %c0_0] : memref<16x1xf32, #tpu.memory_space<vmem>>, vector<16x1xf32>
    %5 = arith.sitofp %3 : vector<16x256xi32> to vector<16x256xf32>
    %6 = vector.broadcast %4 : vector<16x1xf32> to vector<16x256xf32>
    %7 = arith.mulf %6, %5 : vector<16x256xf32>
    %8 = math.sin %7 : vector<16x256xf32>
    %c0_1 = arith.constant 0 : index
    %c0_2 = arith.constant 0 : index
    %9 = vector.load %arg2[%c0_1, %c0_2] : memref<16x256xf32, #tpu.memory_space<vmem>>, vector<16x256xf32>
    tpu.vector_store %arg2[%c0_1, %c0_2], %8 {strides = array<i32>} : memref<16x256xf32, #tpu.memory_space<vmem>>, vector<16x256xf32>,
    %10 = math.cos %7 : vector<16x256xf32>
    %c0_3 = arith.constant 0 : index
    %c0_4 = arith.constant 0 : index
    %11 = vector.load %arg3[%c0_3, %c0_4] : memref<16x256xf32, #tpu.memory_space<vmem>>, vector<16x256xf32>
    tpu.vector_store %arg3[%c0_3, %c0_4], %10 {strides = array<i32>} : memref<16x256xf32, #tpu.memory_space<vmem>>, vector<16x256xf32>,
    return
  }
  func.func @transform_0(%arg0: i32) -> (i32, i32) {
    %c0_i32 = arith.constant 0 : i32
    %c0_i32_0 = arith.constant 0 : i32
    %c0_i32_1 = arith.constant 0 : i32
    return %c0_i32, %c0_i32_0 : i32, i32
  }
  func.func @transform_1(%arg0: i32) -> (i32, i32) {
    %c0_i32 = arith.constant 0 : i32
    %c0_i32_0 = arith.constant 0 : i32
    return %c0_i32, %arg0 : i32, i32
  }
  func.func @transform_2(%arg0: i32) -> (i32, i32) {
    %c0_i32 = arith.constant 0 : i32
    %c0_i32_0 = arith.constant 0 : i32
    return %c0_i32, %arg0 : i32, i32
  }
}

</mosaic_0001>

<bundles_post_ra>
// kernel: _build_rope_tables.1
= control target key start
LH: loop header
LB: loop body
LE: loop exit
PB: predicated region body
PF: predicated region fallthrough
CT: control target
= control target key end

     0   :  { %8 = vsyncpa [#allocation3], 0  ;;  %s1408_s0 = inlined_call_operand.vmem [shape: f32[16,1], index: 0, kind: input, shape index: {}]   ;;  %s1409_s1 = inlined_call_operand.hbm [shape: f32[16,256], index: 1, kind: output, shape index: {0}]   ;;  %s1410_s2 = inlined_call_operand.hbm [shape: f32[16,256], index: 2, kind: output, shape index: {1}]  }
   0x1   :  { %v19_v0 = vld [vmem:[%s1408_s0] sm:$0xff] }
   0x2   :  { %9 = vsyncpa [#allocation5], 0  ;;  %v1029_v1 = vmov 0   ;;  %v20_v2 = vld [vmem:[%s1408_s0 + $0x8] sm:$0xff]  ;;  %v13_v3 = vlaneseq  ;;  %v1030_v40 = vmov 683565275  }
   0x3   :  { %964 = vset.pattern.permute.xlu0 %v1029_v1  ;;  %v1031_v44 = vmov 2475754826   ;;  %v1032_v46 = vmov 2131351028   ;;  %v1033_v48 = vmov 2102212464  }
   0x4   :  { %25 = vperm.xlu0 %964, %v19_v0   ;;  %v14_v4 = vand.u32 127, %v13_v3  ;;  %v1034_v50 = vmov 920167782   ;;  %v1035_v57 = vmov 1326507024   ;;  %s1036_s0 = smov [#allocation2]  }
   0x5   :  { %s878_s13 = sshll.u32 %s1036_s0, 4  ;;  %s1037_s14 = smov [#allocation4]   ;;  %s879_s13 = int_to_ptr.vmem [resolvable:$true] %s878_s13 }
   0x6   :  { %v1061_v5 = vadd.s32 128, %v14_v4  ;;  %v21_v6 = vcvt.s32.f32 %v14_v4  ;;  %s890_s15 = sshll.u32 %s1037_s14, 4  ;;  %s981_s16 = scalar_lea.vmem %s879_s13, 512  ;;  %s1377_s15 = int_to_ptr.vmem [resolvable:$true] %s890_s15 }
   0x7   :  { %p982_p0 = scmp.ne.s32.totalorder %s879_s13, %s981_s16  ;;  %p986_p1 = scmp.lt.s32.totalorder %s879_s13, %s879_s13 }
   0x8   :  { %30 = vperm.xlu0 %964, %v20_v2   ;;  %v22_v7 = vcvt.s32.f32 %v1061_v5  ;;  %p987_p2 = scmp.lt.s32.totalorder %s981_s16, %s981_s16 }
   0xa   :  { %p988_p3 = por %p987_p2, %p986_p1 }
   0xc   :  { %p989_p4 = pnand %p988_p3, %p982_p0 }
  0x83   :  { %v26_v8 = vpop.permute.xlu0 %25 }
  0x84   :  { %v1064_v9 = vmul.f32 %v26_v8, %v21_v6  ;;  %v1068_v10 = vmul.f32 %v26_v8, %v22_v7 }
  0x86   :  { %v37_v11 = vand.u32 2147483647, %v1064_v9  ;;  %v40_v12 = vand.u32 2139095040, %v1064_v9  ;;  %v141_v14 = vand.u32 2147483647, %v1068_v10  ;;  %v144_v15 = vand.u32 2139095040, %v1068_v10 }
  0x87   :  { %v1072_v13 = vpop.permute.xlu0 %30  ;;  %vm39_vm13 = vcmp.lt.s32.totalorder %v1064_v9, 0  ;;  %vm143_vm14 = vcmp.lt.s32.totalorder %v1068_v10, 0 }
  0x88   :  { %v1077_v16 = vmul.f32 %v1072_v13, %v21_v6  ;;  %v41_v17 = vshrl.u32 %v40_v12, 23  ;;  %v44_v18 = vand.u32 8388607, %v37_v11  ;;  %v145_v19 = vshrl.u32 %v144_v15, 23 }
  0x89   :  { %v148_v21 = vand.u32 8388607, %v141_v14 }
  0x8a   :  { %v905_v20 = vadd.s32 4294967169, %v41_v17  ;;  %v909_v22 = vadd.s32 4294967169, %v145_v19  ;;  %v248_v23 = vand.u32 2139095040, %v1077_v16  ;;  %v245_v25 = vand.u32 2147483647, %v1077_v16 }
  0x8b   :  { %v45_v26 = vor.u32 8388608, %v44_v18  ;;  %v149_v27 = vor.u32 8388608, %v148_v21 }
  0x8c   :  { %v47_v24 = vadd.s32 1, %v905_v20  ;;  %v151_v28 = vadd.s32 1, %v909_v22  ;;  %v249_v29 = vshrl.u32 %v248_v23, 23  ;;  %v1093_v38 = vand.u32 8388607, %v245_v25 }
  0x8d   :  { %v1085_v35 = vshll.u32 %v45_v26, 8  ;;  %v1089_v37 = vshll.u32 %v149_v27, 8 }
  0x8e   :  { %vm48_vm0 = vcmp.gt.s32.totalorder %v47_v24, 0  ;;  %vm152_vm1 = vcmp.gt.s32.totalorder %v151_v28, 0  ;;  %v913_v31 = vadd.s32 4294967169, %v249_v29 }
  0x8f   :  { %v49_v30 = vsel %vm48_vm0, %v47_v24, 0  ;;  %v153_v34 = vsel %vm152_vm1, %v151_v28, 0 }
  0x90   :  { %v50_v32 = vshrl.u32 %v49_v30, 5  ;;  %v51_v33 = vand.u32 31, %v49_v30  ;;  %v1087_v36 = vshrl.u32 %v153_v34, 5  ;;  %v155_v42 = vand.u32 31, %v153_v34 }
  0x91   :  { %v1096_v43 = vadd.s32 1, %v913_v31 }
  0x92   :  { %v52_v39 = vsub.s32 32, %v51_v33  ;;  %v54_v41 = vshll.u32 %v1030_v40, %v51_v33  ;;  %v57_v45 = vshll.u32 %v1031_v44, %v51_v33  ;;  %v60_v47 = vshll.u32 %v1032_v46, %v51_v33 }
  0x93   :  { %v63_v49 = vshll.u32 %v1033_v48, %v51_v33  ;;  %v66_v51 = vshll.u32 %v1034_v50, %v51_v33  ;;  %vm69_vm2 = vcmp.lt.s32.totalorder %v50_v32, 1  ;;  %vm70_vm3 = vcmp.lt.s32.totalorder %v50_v32, 2 }
  0x94   :  { %v55_v52 = vshrl.u32 %v1031_v44, %v52_v39  ;;  %v58_v53 = vshrl.u32 %v1032_v46, %v52_v39  ;;  %v61_v54 = vshrl.u32 %v1033_v48, %v52_v39  ;;  %v53_v55 = vshrl.u32 %v1030_v40, %v52_v39 }
  0x95   :  { %v64_v56 = vshrl.u32 %v1034_v50, %v52_v39  ;;  %v67_v58 = vshrl.u32 %v1035_v57, %v52_v39  ;;  %v156_v62 = vsub.s32 32, %v155_v42  ;;  %vm71_vm4 = vcmp.lt.s32.totalorder %v50_v32, 3 }
  0x96   :  { %v56_v59 = vor.u32 %v55_v52, %v54_v41  ;;  %v59_v60 = vor.u32 %v58_v53, %v57_v45  ;;  %v62_v61 = vor.u32 %v61_v54, %v60_v47  ;;  %vm72_vm5 = vcmp.lt.s32.totalorder %v50_v32, 4 }
  0x97   :  { %v65_v63 = vor.u32 %v64_v56, %v63_v49  ;;  %v68_v0 = vor.u32 %v67_v58, %v66_v51  ;;  %v158_v15 = vshll.u32 %v1030_v40, %v155_v42  ;;  %v159_v19 = vshrl.u32 %v1031_v44, %v156_v62 }
  0x98   :  { %v73_v1 = vsel %vm69_vm2, %v53_v55, %v56_v59  ;;  %v74_v2 = vsel %vm72_vm5, %v62_v61, 2102212464  ;;  %v77_v3 = vsel %vm69_vm2, %v56_v59, %v59_v60  ;;  %v81_v4 = vsel %vm69_vm2, %v59_v60, %v62_v61 }
  0x99   :  { %v75_v6 = vsel %vm71_vm4, %v59_v60, %v74_v2  ;;  %v78_v8 = vsel %vm72_vm5, %v65_v63, 920167782  ;;  %v82_v12 = vsel %vm72_vm5, %v68_v0, 1326507024  ;;  %v161_v20 = vshll.u32 %v1031_v44, %v155_v42 }
  0x9a   :  { %v79_v17 = vsel %vm71_vm4, %v62_v61, %v78_v8  ;;  %v83_v18 = vsel %vm71_vm4, %v65_v63, %v82_v12  ;;  %v76_v21 = vsel %vm70_vm3, %v73_v1, %v75_v6  ;;  %v162_v24 = vshrl.u32 %v1032_v46, %v156_v62 }
  0x9b   :  { %v80_v22 = vsel %vm70_vm3, %v77_v3, %v79_v17  ;;  %v84_v23 = vsel %vm70_vm3, %v81_v4, %v83_v18  ;;  %v160_v30 = vor.u32 %v159_v19, %v158_v15  ;;  %v164_v33 = vshll.u32 %v1032_v46, %v155_v42 }
  0x9c   :  { %v1119_v26 = vmul.u32.u64.low %v1085_v35, %v84_v23  ;;  %v1120_v27 = vmul.u32.u64.high %v1085_v35, %v84_v23, %v1119_v26  ;;  %v1123_v28 = vmul.u32.u64.low %v1085_v35, %v80_v22  ;;  %v1124_v29 = vmul.u32.u64.high %v1085_v35, %v80_v22, %v1123_v28 }
  0x9d   :  { %v163_v31 = vor.u32 %v162_v24, %v161_v20  ;;  %v165_v34 = vshrl.u32 %v1033_v48, %v156_v62  ;;  %v157_v39 = vshrl.u32 %v1030_v40, %v156_v62  ;;  %v167_v32 = vshll.u32 %v1033_v48, %v155_v42 }
  0x9e   :  { %v168_v41 = vshrl.u32 %v1034_v50, %v156_v62  ;;  %v171_v45 = vshrl.u32 %v1035_v57, %v156_v62  ;;  %v92_v47 = vmul.u32 %v1085_v35, %v76_v21  ;;  %v170_v51 = vshll.u32 %v1034_v50, %v155_v42 }
  0x9f   :  { %v166_v49 = vor.u32 %v165_v34, %v164_v33  ;;  %vm173_vm6 = vcmp.lt.s32.totalorder %v1087_v36, 1  ;;  %vm94_vm7 = vc.u32 %v1120_v27, %v1123_v28  ;;  %v95_v52 = vadd.s32 1, %v1124_v29 }
  0xa0   :  { %v169_v53 = vor.u32 %v168_v41, %v167_v32  ;;  %vm174_vm8 = vcmp.lt.s32.totalorder %v1087_v36, 2  ;;  %v172_v54 = vor.u32 %v171_v45, %v170_v51  ;;  %vm175_vm9 = vcmp.lt.s32.totalorder %v1087_v36, 3 }
  0xa1   :  { %vm176_vm10 = vcmp.lt.s32.totalorder %v1087_v36, 4  ;;  %v181_v55 = vsel %vm173_vm6, %v160_v30, %v163_v31  ;;  %v96_v35 = vsel %vm94_vm7, %v95_v52, %v1124_v29  ;;  %v185_v42 = vsel %vm173_vm6, %v163_v31, %v166_v49 }
  0xa2   :  { %v178_v56 = vsel %vm176_vm10, %v166_v49, 2102212464  ;;  %v182_v58 = vsel %vm176_vm10, %v169_v53, 920167782  ;;  %v97_v59 = vadd.s32 %v96_v35, %v92_v47  ;;  %v177_v60 = vsel %vm173_vm6, %v157_v39, %v160_v30 }
  0xa3   :  { %v183_v61 = vsel %vm175_vm9, %v166_v49, %v182_v58  ;;  %v186_v62 = vsel %vm176_vm10, %v172_v54, 1326507024  ;;  %v179_v63 = vsel %vm175_vm9, %v163_v31, %v178_v56  ;;  %vm256_vm11 = vcmp.gt.s32.totalorder %v1096_v43, 0 }
  0xa4   :  { %v184_v0 = vsel %vm174_vm8, %v181_v55, %v183_v61  ;;  %v187_v1 = vsel %vm175_vm9, %v169_v53, %v186_v62  ;;  %v98_v2 = vadd.s32 536870912, %v97_v59  ;;  %v257_v15 = vsel %vm256_vm11, %v1096_v43, 0 }
  0xa5   :  { %v188_v3 = vsel %vm174_vm8, %v185_v42, %v187_v1  ;;  %v1147_v4 = vmul.u32.u64.low %v1089_v37, %v184_v0  ;;  %v1148_v6 = vmul.u32.u64.high %v1089_v37, %v184_v0, %v1147_v4  ;;  %v180_v18 = vsel %vm174_vm8, %v177_v60, %v179_v63 }
  0xa6   :  { %v1152_v8 = vmul.u32.u64.low %v1089_v37, %v188_v3  ;;  %v1153_v12 = vmul.u32.u64.high %v1089_v37, %v188_v3, %v1152_v8  ;;  %v1156_v17 = vshrl.u32 %v98_v2, 30  ;;  %v259_v19 = vand.u32 31, %v257_v15 }
  0xa7   :  { %v1163_v20 = vmul.f32 %v1072_v13, %v22_v7  ;;  %v199_v22 = vadd.s32 1, %v1148_v6  ;;  %v253_v23 = vor.u32 8388608, %v1093_v38  ;;  %v196_v24 = vmul.u32 %v1089_v37, %v180_v18 }
  0xa8   :  { %v100_v21 = vshll.u32 %v1156_v17, 30  ;;  %vm198_vm12 = vc.u32 %v1153_v12, %v1147_v4  ;;  %v260_v43 = vsub.s32 32, %v259_v19  ;;  %v93_v33 = vadd.s32 %v1123_v28, %v1120_v27 }
  0xa9   :  { %v200_v26 = vsel %vm198_vm12, %v199_v22, %v1148_v6  ;;  %v1175_v13 = vshll.u32 %v253_v23, 8  ;;  %v349_v29 = vand.u32 2147483647, %v1163_v20  ;;  %v352_v31 = vand.u32 2139095040, %v1163_v20 }
  0xaa   :  { %v1171_v36 = vsub.s32 %v97_v59, %v100_v21  ;;  %v201_v5 = vadd.s32 %v200_v26, %v196_v24  ;;  %v263_v38 = vshrl.u32 %v1031_v44, %v260_v43  ;;  %v266_v37 = vshrl.u32 %v1032_v46, %v260_v43 }
  0xab   :  { %v269_v39 = vshrl.u32 %v1033_v48, %v260_v43  ;;  %v272_v32 = vshrl.u32 %v1034_v50, %v260_v43  ;;  %v258_v45 = vshrl.u32 %v257_v15, 5  ;;  %v262_v47 = vshll.u32 %v1030_v40, %v259_v19 }
  0xac   :  { %v103_v7 = vsub.s32 0, %v1171_v36  ;;  %v202_v30 = vadd.s32 536870912, %v201_v5  ;;  %v265_v49 = vshll.u32 %v1031_v44, %v259_v19  ;;  %v268_v52 = vshll.u32 %v1032_v46, %v259_v19 }
  0xad   :  { %v271_v53 = vshll.u32 %v1033_v48, %v259_v19  ;;  %v275_v27 = vshrl.u32 %v1035_v57, %v260_v43  ;;  %v123_v28 = vsub.s32 4, %v1156_v17  ;;  %v264_v55 = vor.u32 %v263_v38, %v262_v47 }
  0xae   :  { %v906_v34 = vmin.u32 %v103_v7, %v1171_v36  ;;  %v203_v41 = vshrl.u32 %v202_v30, 30  ;;  %v267_v35 = vor.u32 %v266_v37, %v265_v49  ;;  %v270_v58 = vor.u32 %v269_v39, %v268_v52 }
  0xaf   :  { %v273_v42 = vor.u32 %v272_v32, %v271_v53  ;;  %v274_v59 = vshll.u32 %v1034_v50, %v259_v19  ;;  %v261_v62 = vshrl.u32 %v1030_v40, %v260_v43  ;;  %vm277_vm15 = vcmp.lt.s32.totalorder %v258_v45, 1 }
  0xb0   :  { %v105_v51 = vclz %v906_v34  ;;  %v204_v54 = vshll.u32 %v203_v41, 30  ;;  %v227_v61 = vsub.s32 4, %v203_v41  ;;  %vm278_vm1 = vcmp.lt.s32.totalorder %v258_v45, 2 }
  0xb1   :  { %v276_v63 = vor.u32 %v275_v27, %v274_v59  ;;  %vm279_vm2 = vcmp.lt.s32.totalorder %v258_v45, 3  ;;  %vm1199_vm3 = vcmp.le.f32.partialorder %v37_v11, 0.7853982  ;;  %vm280_vm4 = vcmp.lt.s32.totalorder %v258_v45, 4 }
  0xb2   :  { %v907_v56 = vadd.s32 4294967294, %v105_v51  ;;  %v1194_v60 = vsub.s32 %v201_v5, %v204_v54  ;;  %v285_v3 = vsel %vm277_vm15, %v264_v55, %v267_v35  ;;  %vm1207_vm5 = vcmp.le.f32.partialorder %v141_v14, 0.7853982 }
  0xb3   :  { %v282_v18 = vsel %vm280_vm4, %v270_v58, 2102212464  ;;  %v286_v19 = vsel %vm280_vm4, %v273_v42, 920167782  ;;  %v289_v23 = vsel %vm277_vm15, %v267_v35, %v270_v58  ;;  %v290_v5 = vsel %vm280_vm4, %v276_v63, 1326507024 }
  0xb4   :  { %vm908_vm0 = vcmp.lt.s32.totalorder %v907_v56, 0  ;;  %v207_v2 = vsub.s32 0, %v1194_v60  ;;  %v287_v22 = vsel %vm279_vm2, %v270_v58, %v286_v19  ;;  %v124_v14 = vsel %vm39_vm13, %v123_v28, %v1156_v17 }
  0xb5   :  { %v108_v1 = vsel %vm908_vm0, 0, %v907_v56  ;;  %v288_v26 = vsel %vm278_vm1, %v285_v3, %v287_v22  ;;  %v281_v30 = vsel %vm277_vm15, %v261_v62, %v264_v55  ;;  %v353_v38 = vshrl.u32 %v352_v31, 23 }
  0xb6   :  { %v109_v6 = vsub.s32 32, %v108_v1  ;;  %v113_v8 = vsub.s32 4294967266, %v108_v1  ;;  %v110_v11 = vshll.u32 %v1171_v36, %v108_v1  ;;  %v910_v21 = vmin.u32 %v207_v2, %v1194_v60 }
  0xb7   :  { %v283_v34 = vsel %vm279_vm2, %v267_v35, %v282_v18  ;;  %v291_v39 = vsel %vm279_vm2, %v273_v42, %v290_v5  ;;  %v1224_v47 = vmul.u32.u64.low %v1175_v13, %v288_v26  ;;  %v1225_v49 = vmul.u32.u64.high %v1175_v13, %v288_v26, %v1224_v47 }
  0xb8   :  { %v111_v24 = vshrl.u32 %v93_v33, %v109_v6  ;;  %v114_v43 = vadd.s32 127, %v113_v8  ;;  %v209_v7 = vclz %v910_v21  ;;  %v292_v33 = vsel %vm278_vm1, %v289_v23, %v291_v39 }
  0xb9   :  { %v228_v17 = vsel %vm143_vm14, %v227_v61, %v203_v41  ;;  %v1230_v52 = vmul.u32.u64.low %v1175_v13, %v292_v33  ;;  %v1231_v31 = vmul.u32.u64.high %v1175_v13, %v292_v33, %v1230_v52  ;;  %v197_v53 = vadd.s32 %v1147_v4, %v1153_v12 }
  0xba   :  { %v112_v36 = vor.u32 %v111_v24, %v110_v11  ;;  %v115_v37 = vshll.u32 %v114_v43, 23  ;;  %v911_v32 = vadd.s32 4294967294, %v209_v7  ;;  %v284_v27 = vsel %vm278_vm1, %v281_v30, %v283_v34 }
  0xbb   :  { %v917_v28 = vadd.s32 4294967169, %v353_v38  ;;  %v126_v35 = vsel %vm1199_vm3, 0, %v124_v14  ;;  %v230_v41 = vsel %vm1207_vm5, 0, %v228_v17  ;;  %v303_v59 = vadd.s32 1, %v1225_v49 }
  0xbc   :  { %v116_v51 = vor.u32 4788187, %v115_v37  ;;  %vm912_vm6 = vcmp.lt.s32.totalorder %v911_v32, 0  ;;  %v119_v55 = vcvt.s32.f32 %v112_v36  ;;  %v300_v4 = vmul.u32 %v1175_v13, %v284_v27 }
  0xbd   :  { %v212_v56 = vsel %vm912_vm6, 0, %v911_v32  ;;  %vm302_vm7 = vc.u32 %v1231_v31, %v1224_v47  ;;  %v359_v12 = vadd.s32 1, %v917_v28  ;;  %v130_v3 = vadd.s32 3, %v126_v35 }
  0xbe   :  { %v117_v54 = vand.u32 2147483647, %v116_v51  ;;  %v213_v58 = vsub.s32 32, %v212_v56  ;;  %v217_v42 = vsub.s32 4294967266, %v212_v56  ;;  %v214_v45 = vshll.u32 %v1194_v60, %v212_v56 }
  0xbf   :  { %v304_v1 = vsel %vm302_vm7, %v303_v59, %v1225_v49  ;;  %vm360_vm8 = vcmp.gt.s32.totalorder %v359_v12, 0  ;;  %v234_v19 = vadd.s32 3, %v230_v41  ;;  %v356_v22 = vand.u32 8388607, %v349_v29 }
  0xc0   :  { %v120_v61 = vmul.f32 %v119_v55, %v117_v54  ;;  %v215_v62 = vshrl.u32 %v197_v53, %v213_v58  ;;  %v218_v63 = vadd.s32 127, %v217_v42  ;;  %v305_v6 = vadd.s32 %v304_v1, %v300_v4 }
  0xc1   :  { %v361_v11 = vsel %vm360_vm8, %v359_v12, 0  ;;  %v1252_v43 = vand.u32 3, %v130_v3  ;;  %v1256_v30 = vand.u32 3, %v234_v19  ;;  %v357_v36 = vor.u32 8388608, %v356_v22 }
  0xc2   :  { %v121_v2 = vxor.u32 2147483648, %v120_v61  ;;  %v216_v8 = vor.u32 %v215_v62, %v214_v45  ;;  %v219_v18 = vshll.u32 %v218_v63, 23  ;;  %v306_v21 = vadd.s32 536870912, %v305_v6 }
  0xc3   :  { %v363_v60 = vand.u32 31, %v361_v11  ;;  %v1260_v34 = vand.u32 3, %v126_v35  ;;  %v1264_v33 = vand.u32 3, %v230_v41  ;;  %vm136_vm9 = vcmp.eq.s32.totalorder %v1252_v43, 2 }
  0xc4   :  { %v122_v13 = vsel %vm39_vm13, %v121_v2, %v120_v61  ;;  %v220_v24 = vor.u32 4788187, %v219_v18  ;;  %v1254_v26 = vshrl.u32 %v306_v21, 30  ;;  %v223_v7 = vcvt.s32.f32 %v216_v8 }
  0xc5   :  { %v125_v23 = vsel %vm1199_vm3, %v1064_v9, %v122_v13  ;;  %v364_v5 = vsub.s32 32, %v363_v60  ;;  %v1268_v49 = vadd.s32 %v1224_v47, %v1231_v31  ;;  %v366_v17 = vshll.u32 %v1030_v40, %v363_v60 }
  0xc6   :  { %965 = vcosq.f32 %v125_v23  ;;  %v221_v14 = vand.u32 2147483647, %v220_v24  ;;  %v308_v38 = vshll.u32 %v1254_v26, 30  ;;  %vm133_vm10 = vcmp.eq.s32.totalorder %v1252_v43, 0 }
  0xc7   :  { %967 = vsinq.f32 %v125_v23  ;;  %v367_v37 = vshrl.u32 %v1031_v44, %v364_v5  ;;  %v370_v39 = vshrl.u32 %v1032_v46, %v364_v5  ;;  %v373_v32 = vshrl.u32 %v1033_v48, %v364_v5 }
  0xc8   :  { %v224_v0 = vmul.f32 %v223_v7, %v221_v14  ;;  %v1270_v51 = vsub.s32 %v305_v6, %v308_v38  ;;  %v376_v52 = vshrl.u32 %v1034_v50, %v364_v5  ;;  %v362_v27 = vshrl.u32 %v361_v11, 5 }
  0xc9   :  { %v369_v28 = vshll.u32 %v1031_v44, %v363_v60  ;;  %v372_v54 = vshll.u32 %v1032_v46, %v363_v60  ;;  %vm132_vm11 = vcmp.lt.s32.totalorder %v1252_v43, 2  ;;  %v368_v47 = vor.u32 %v367_v37, %v366_v17 }
  0xca   :  { %v225_v53 = vxor.u32 2147483648, %v224_v0  ;;  %v311_v55 = vsub.s32 0, %v1270_v51  ;;  %v375_v31 = vshll.u32 %v1033_v48, %v363_v60  ;;  %v1280_v35 = vshll.u32 %v357_v36, 8 }
  0xcb   :  { %vm129_vm12 = vweird.f32 %v1064_v9  ;;  %v371_v58 = vor.u32 %v370_v39, %v369_v28  ;;  %v374_v42 = vor.u32 %v373_v32, %v372_v54  ;;  %v379_v44 = vshrl.u32 %v1035_v57, %v364_v5 }
  0xcc   :  { %v226_v56 = vsel %vm143_vm14, %v225_v53, %v224_v0  ;;  %v914_v41 = vmin.u32 %v311_v55, %v1270_v51  ;;  %v377_v59 = vor.u32 %v376_v52, %v375_v31  ;;  %v378_v48 = vshll.u32 %v1034_v50, %v363_v60 }
  0xcd   :  { %v229_v46 = vsel %vm1207_vm5, %v1068_v10, %v226_v56  ;;  %vm552_vm13 = vcmp.eq.s32.totalorder %v1260_v34, 0  ;;  %v365_v61 = vshrl.u32 %v1030_v40, %v364_v5  ;;  %vm381_vm15 = vcmp.lt.s32.totalorder %v362_v27, 1 }
  0xce   :  { %969 = vcosq.f32 %v229_v46  ;;  %vm383_vm14 = vcmp.lt.s32.totalorder %v362_v27, 3  ;;  %v313_v12 = vclz %v914_v41  ;;  %v380_v57 = vor.u32 %v379_v44, %v378_v48 }
  0xcf   :  { %971 = vsinq.f32 %v229_v46  ;;  %vm384_vm0 = vcmp.lt.s32.totalorder %v362_v27, 4  ;;  %vm555_vm1 = vcmp.eq.s32.totalorder %v1260_v34, 2  ;;  %v385_v62 = vsel %vm381_vm15, %v365_v61, %v368_v47 }
  0xd0   :  { %v966_v4 = vpop.eup %965  ;;  %v386_v50 = vsel %vm384_vm0, %v374_v42, 2102212464  ;;  %v389_v63 = vsel %vm381_vm15, %v368_v47, %v371_v58  ;;  %vm551_vm2 = vcmp.lt.s32.totalorder %v1260_v34, 2  ;;  %v915_v1 = vadd.s32 4294967294, %v313_v12 }
  0xd1   :  { %v968_v15 = vpop.eup %967  ;;  %v137_v45 = vxor.u32 2147483648, %v966_v4  ;;  %v387_v2 = vsel %vm383_vm14, %v371_v58, %v386_v50  ;;  %v390_v3 = vsel %vm384_vm0, %v377_v59, 920167782  ;;  %vm240_vm3 = vcmp.eq.s32.totalorder %v1256_v30, 2 }
  0xd2   :  { %v134_v40 = vxor.u32 2147483648, %v968_v15  ;;  %vm382_vm4 = vcmp.lt.s32.totalorder %v362_v27, 2  ;;  %v391_v8 = vsel %vm383_vm14, %v374_v42, %v390_v3  ;;  %v393_v18 = vsel %vm381_vm15, %v371_v58, %v374_v42 }
  0xd3   :  { %v138_v6 = vsel %vm136_vm9, %v137_v45, %v968_v15  ;;  %vm237_vm5 = vcmp.eq.s32.totalorder %v1256_v30, 0  ;;  %vm916_vm6 = vcmp.lt.s32.totalorder %v915_v1, 0  ;;  %v392_v11 = vsel %vm382_vm4, %v389_v63, %v391_v8 }
  0xd4   :  { %v135_v19 = vsel %vm133_vm10, %v966_v4, %v134_v40  ;;  %v394_v13 = vsel %vm384_vm0, %v380_v57, 1326507024  ;;  %vm236_vm7 = vcmp.lt.s32.totalorder %v1256_v30, 2  ;;  %v316_v22 = vsel %vm916_vm6, 0, %v915_v1 }
  0xd5   :  { %v139_v21 = vsel %vm132_vm11, %v135_v19, %v138_v6  ;;  %v388_v60 = vsel %vm382_vm4, %v385_v62, %v387_v2  ;;  %v395_v23 = vsel %vm383_vm14, %v377_v59, %v394_v13  ;;  %vm233_vm8 = vweird.f32 %v1068_v10 }
  0xd6   :  { %v140_v24 = vsel %vm129_vm12, nan, %v139_v21  ;;  %v317_v5 = vsub.s32 32, %v316_v22  ;;  %v318_v14 = vshll.u32 %v1270_v51, %v316_v22  ;;  %v321_v7 = vsub.s32 4294967266, %v316_v22 }
  0xd7   :  { %v396_v38 = vsel %vm382_vm4, %v393_v18, %v395_v23  ;;  %v1321_v43 = vmul.u32.u64.low %v1280_v35, %v392_v11  ;;  %v1322_v36 = vmul.u32.u64.high %v1280_v35, %v392_v11, %v1321_v43  ;;  %453 = vst [vmem:[#allocation2] sm:$0xff] %v140_v24  ;;  %v554_v37 = vsel %vm552_vm13, %v966_v4, %v134_v40 }
  0xd8   :  { %v319_v0 = vshrl.u32 %v1268_v49, %v317_v5  ;;  %v322_v39 = vadd.s32 127, %v321_v7  ;;  %v1329_v32 = vmul.u32.u64.low %v1280_v35, %v396_v38  ;;  %v1330_v17 = vmul.u32.u64.high %v1280_v35, %v396_v38, %v1329_v32  ;;  %v970_v51 = vpop.eup %969 }
  0xd9   :  { %v331_v52 = vsub.s32 4, %v1254_v26  ;;  %v404_v53 = vmul.u32 %v1280_v35, %v388_v60  ;;  %v557_v27 = vsel %vm555_vm1, %v137_v45, %v968_v15  ;;  %vm654_vm9 = vcmp.lt.s32.totalorder %v1264_v33, 2  ;;  %v972_v28 = vpop.eup %971 }
  0xda   :  { %v241_v54 = vxor.u32 2147483648, %v970_v51  ;;  %v320_v55 = vor.u32 %v319_v0, %v318_v14  ;;  %v323_v47 = vshll.u32 %v322_v39, 23  ;;  %v558_v49 = vsel %vm551_vm2, %v554_v37, %v557_v27 }
  0xdb   :  { %v238_v31 = vxor.u32 2147483648, %v972_v28  ;;  %v407_v56 = vadd.s32 1, %v1322_v36  ;;  %v559_v58 = vsel %vm129_vm12, nan, %v558_v49  ;;  %vm655_vm10 = vcmp.eq.s32.totalorder %v1264_v33, 0 }
  0xdc   :  { %v242_v35 = vsel %vm240_vm3, %v241_v54, %v972_v28  ;;  %v324_v42 = vor.u32 4788187, %v323_v47  ;;  %v327_v44 = vcvt.s32.f32 %v320_v55  ;;  %vm658_vm11 = vcmp.eq.s32.totalorder %v1264_v33, 2  ;;  %869 = vst [vmem:[#allocation4] sm:$0xff] %v559_v58 }
  0xdd   :  { %v239_v34 = vsel %vm237_vm5, %v970_v51, %v238_v31  ;;  %vm406_vm13 = vc.u32 %v1330_v17, %v1321_v43  ;;  %v657_v46 = vsel %vm655_vm10, %v970_v51, %v238_v31  ;;  %v660_v41 = vsel %vm658_vm11, %v241_v54, %v972_v28 }
  0xde   :  { %v243_v9 = vsel %vm236_vm7, %v239_v34, %v242_v35  ;;  %v325_v59 = vand.u32 2147483647, %v324_v42  ;;  %v408_v48 = vsel %vm406_vm13, %v407_v56, %v1322_v36  ;;  %v661_v61 = vsel %vm654_vm9, %v657_v46, %v660_v41 }
  0xdf   :  { %v244_v4 = vsel %vm233_vm8, nan, %v243_v9  ;;  %v409_v12 = vadd.s32 %v408_v48, %v404_v53  ;;  %v662_v57 = vsel %vm233_vm8, nan, %v661_v61  ;;  %vm247_vm12 = vcmp.lt.s32.totalorder %v1077_v16, 0 }
  0xe0   :  { %v328_v15 = vmul.f32 %v327_v44, %v325_v59  ;;  %454 = vst [vmem:[#allocation2 + $0x8] sm:$0xff] %v244_v4  ;;  %870 = vst [vmem:[#allocation4 + $0x8] sm:$0xff] %v662_v57  ;;  %v332_v62 = vsel %vm247_vm12, %v331_v52, %v1254_v26  ;;  %vm246_vm15 = vcmp.le.f32.partialorder %v245_v25, 0.7853982  ;;  %vm337_vm14 = vweird.f32 %v1077_v16 }
  0xe1   :  { %v410_v30 = vadd.s32 536870912, %v409_v12  ;;  %v334_v40 = vsel %vm246_vm15, 0, %v332_v62  ;;  %v405_v21 = vadd.s32 %v1321_v43, %v1330_v17  ;;  %vm351_vm7 = vcmp.lt.s32.totalorder %v1163_v20, 0 }
  0xe2   :  { %v329_v45 = vxor.u32 2147483648, %v328_v15  ;;  %v338_v2 = vadd.s32 3, %v334_v40  ;;  %v756_v19 = vand.u32 3, %v334_v40  ;;  %vm350_vm8 = vcmp.le.f32.partialorder %v349_v29, 0.7853982 }
  0xe3   :  { %v411_v50 = vshrl.u32 %v410_v30, 30 }
  0xe4   :  { %v330_v33 = vsel %vm247_vm12, %v329_v45, %v328_v15  ;;  %v339_v8 = vand.u32 3, %v338_v2  ;;  %vm757_vm4 = vcmp.lt.s32.totalorder %v756_v19, 2  ;;  %vm758_vm5 = vcmp.eq.s32.totalorder %v756_v19, 0 }
  0xe5   :  { %v333_v63 = vsel %vm246_vm15, %v1077_v16, %v330_v33  ;;  %v412_v1 = vshll.u32 %v411_v50, 30  ;;  %vm761_vm6 = vcmp.eq.s32.totalorder %v756_v19, 2  ;;  %v435_v55 = vsub.s32 4, %v411_v50 }
  0xe6   :  { %973 = vcosq.f32 %v333_v63  ;;  %vm340_vm0 = vcmp.lt.s32.totalorder %v339_v8, 2  ;;  %vm341_vm1 = vcmp.eq.s32.totalorder %v339_v8, 0  ;;  %vm344_vm2 = vcmp.eq.s32.totalorder %v339_v8, 2 }
  0xe7   :  { %975 = vsinq.f32 %v333_v63  ;;  %v413_v10 = vsub.s32 %v409_v12, %v412_v1  ;;  %v436_v31 = vsel %vm351_vm7, %v435_v55, %v411_v50 }
  0xe8   :  { %v438_v56 = vsel %vm350_vm8, 0, %v436_v31 }
  0xe9   :  { %v415_v3 = vsub.s32 0, %v413_v10  ;;  %v442_v58 = vadd.s32 3, %v438_v56  ;;  %v859_v42 = vand.u32 3, %v438_v56 }
  0xeb   :  { %v918_v6 = vmin.u32 %v415_v3, %v413_v10  ;;  %v443_v35 = vand.u32 3, %v442_v58  ;;  %vm864_vm10 = vcmp.eq.s32.totalorder %v859_v42, 2  ;;  %vm861_vm13 = vcmp.eq.s32.totalorder %v859_v42, 0 }
  0xec   :  { %vm860_vm15 = vcmp.lt.s32.totalorder %v859_v42, 2 }
  0xed   :  { %v417_v18 = vclz %v918_v6  ;;  %vm448_vm9 = vcmp.eq.s32.totalorder %v443_v35, 2  ;;  %vm445_vm11 = vcmp.eq.s32.totalorder %v443_v35, 0  ;;  %vm444_vm12 = vcmp.lt.s32.totalorder %v443_v35, 2 }
  0xef   :  { %v919_v11 = vadd.s32 4294967294, %v417_v18 }
  0xf0   :  { %v974_v26 = vpop.eup %973 }
  0xf1   :  { %v976_v25 = vpop.eup %975  ;;  %v345_v13 = vxor.u32 2147483648, %v974_v26  ;;  %vm920_vm3 = vcmp.lt.s32.totalorder %v919_v11, 0 }
  0xf2   :  { %v342_v22 = vxor.u32 2147483648, %v976_v25  ;;  %v420_v60 = vsel %vm920_vm3, 0, %v919_v11 }
  0xf3   :  { %v346_v23 = vsel %vm344_vm2, %v345_v13, %v976_v25  ;;  %v421_v24 = vsub.s32 32, %v420_v60  ;;  %v425_v5 = vsub.s32 4294967266, %v420_v60  ;;  %v422_v7 = vshll.u32 %v413_v10, %v420_v60 }
  0xf4   :  { %v343_v14 = vsel %vm341_vm1, %v974_v26, %v342_v22  ;;  %v760_v38 = vsel %vm758_vm5, %v974_v26, %v342_v22  ;;  %v763_v36 = vsel %vm761_vm6, %v345_v13, %v976_v25 }
  0xf5   :  { %v347_v37 = vsel %vm340_vm0, %v343_v14, %v346_v23  ;;  %v423_v0 = vshrl.u32 %v405_v21, %v421_v24  ;;  %v426_v39 = vadd.s32 127, %v425_v5  ;;  %v764_v32 = vsel %vm757_vm4, %v760_v38, %v763_v36 }
  0xf6   :  { %v348_v43 = vsel %vm337_vm14, nan, %v347_v37  ;;  %v765_v17 = vsel %vm337_vm14, nan, %v764_v32  ;;  %vm441_vm14 = vweird.f32 %v1163_v20 }
  0xf7   :  { %v424_v51 = vor.u32 %v423_v0, %v422_v7  ;;  %v427_v52 = vshll.u32 %v426_v39, 23  ;;  %455 = vst [vmem:[#allocation2 + $0x10] sm:$0xff] %v348_v43  ;;  %871 = vst [vmem:[#allocation4 + $0x10] sm:$0xff] %v765_v17 }
  0xf9   :  { %v428_v53 = vor.u32 4788187, %v427_v52  ;;  %v431_v28 = vcvt.s32.f32 %v424_v51 }
  0xfb   :  { %v429_v27 = vand.u32 2147483647, %v428_v53 }
  0xfd   :  { %v432_v54 = vmul.f32 %v431_v28, %v429_v27 }
  0xff   :  { %v433_v47 = vxor.u32 2147483648, %v432_v54 }
 0x101   :  { %v434_v49 = vsel %vm351_vm7, %v433_v47, %v432_v54 }
 0x102   :  { %v437_v16 = vsel %vm350_vm8, %v1163_v20, %v434_v49 }
 0x103   :  { %977 = vcosq.f32 %v437_v16 }
 0x104   :  { %979 = vsinq.f32 %v437_v16 }
 0x10d   :  { %v978_v44 = vpop.eup %977 }
 0x10e   :  { %v980_v34 = vpop.eup %979  ;;  %v449_v46 = vxor.u32 2147483648, %v978_v44 }
 0x10f   :  { %v446_v41 = vxor.u32 2147483648, %v980_v34 }
 0x110   :  { %v450_v29 = vsel %vm448_vm9, %v449_v46, %v980_v34  ;;  %v866_v9 = vsel %vm864_vm10, %v449_v46, %v980_v34 }
 0x111   :  { %v447_v59 = vsel %vm445_vm11, %v978_v44, %v446_v41  ;;  %v863_v48 = vsel %vm861_vm13, %v978_v44, %v446_v41 }
 0x112   :  { %v451_v61 = vsel %vm444_vm12, %v447_v59, %v450_v29  ;;  %v867_v4 = vsel %vm860_vm15, %v863_v48, %v866_v9 }
 0x113   :  { %v452_v12 = vsel %vm441_vm14, nan, %v451_v61  ;;  %v868_v57 = vsel %vm441_vm14, nan, %v867_v4 }
 0x114   :  { %456 = vst [vmem:[#allocation2 + $0x18] sm:$0xff] %v452_v12  ;;  %872 = vst [vmem:[#allocation4 + $0x18] sm:$0xff] %v868_v57 }
 0x115   :  { %992 = shalt.err (!%p989_p4)
}
 0x116   :  { %s993_s19 = scalar_lea.hbm %s1409_s1, 512 }
 0x117   :  { %p994_p5 = scmp.ne.s32.totalorder %s1409_s1, %s993_s19  ;;  %p997_p6 = scmp.lt.u32.totalorder %s993_s19, %s1409_s1 }
 0x119   :  { %p999_p7 = pnand %p997_p6, %p994_p5 }
 0x11b   :  { %1002 = shalt.err (!%p999_p7)
}
 0x11c   :  { %s1038_s24 = smov 256   ;;  %s1039_s25 = smov 16  }
 0x11d   :  { %884 = dma.vmem_to_hbm [thread:$0]  %s879_s13, 512, %s1409_s1, [#allocation3], %s1038_s24, %s1038_s24, %s1039_s25  }
 0x11e   :  { %s1003_s28 = scalar_lea.vmem %s1377_s15, 512  ;;  %p1008_p9 = scmp.lt.s32.totalorder %s1377_s15, %s1377_s15 }
 0x11f   :  { %p1004_p8 = scmp.ne.s32.totalorder %s1377_s15, %s1003_s28  ;;  %p1009_p10 = scmp.lt.s32.totalorder %s1003_s28, %s1003_s28 }
 0x121   :  { %p1010_p11 = por %p1009_p10, %p1008_p9 }
 0x123   :  { %p1011_p12 = pnand %p1010_p11, %p1004_p8 }
 0x125   :  { %1014 = shalt.err (!%p1011_p12)
}
 0x126   :  { %s1015_s3 = scalar_lea.hbm %s1410_s2, 512 }
 0x127   :  { %p1016_p13 = scmp.ne.s32.totalorder %s1410_s2, %s1015_s3  ;;  %p1019_p0 = scmp.lt.u32.totalorder %s1015_s3, %s1410_s2 }
 0x129   :  { %p1021_p1 = pnand %p1019_p0, %p1016_p13 }
 0x12b   :  { %1024 = shalt.err (!%p1021_p1)
}
 0x12c   :  { %896 = dma.vmem_to_hbm [thread:$0]  %s1377_s15, 512, %s1410_s2, [#allocation5], %s1038_s24, %s1038_s24, %s1039_s25  }
 0x12d   :  { %1025 = dma.done.wait [#allocation3], 512  }
 0x12e   :  { %1026 = vsyncadd [#allocation3], 4294966784 }
 0x12f   :  { %1027 = dma.done.wait [#allocation5], 512  }
 0x130   :  { %1028 = vsyncadd [#allocation5], 4294966784 }
 0x131   :  { %903 = vsyncpa [#allocation3], 1 }
 0x132   :  { %904 = vsyncpa [#allocation5], 1 }

</bundles_post_ra>
